<compile_context>
chip_gen: v7x
topology: tpu7x:2x2x1
jax: 0.10.0
libtpu: 0.0.40
codegen_flags: <defaults>
</compile_context>

<pallas_src>
import functools

import jax
import jax.numpy as jnp
from jax import lax
from jax.experimental import pallas as pl
from jax.experimental.pallas import tpu as pltpu

NEG_SLOPE = 0.01  # torch.nn.LeakyReLU default negative_slope


def _round_up(x, m):
    return ((x + m - 1) // m) * m


def _cdiv(a, b):
    return -(-a // b)


# --------------------------- TPU generation config ---------------------------
@functools.lru_cache(maxsize=None)
def _tpu_config():
    """Per-generation row/channel tile targets and a safe VMEM request cap."""
    kind = ""
    try:
        kind = jax.devices()[0].device_kind.lower()
    except Exception:
        pass
    if "v5 lite" in kind or "v5e" in kind or "v5lite" in kind:
        # v5e: 4x 128x128 MXU -> 128-lane weight tiles; plenty of physical VMEM.
        return dict(name="v5e", vmem_cap=96 << 20, tr=256, tn=128)
    if "v6" in kind:
        # v6e: 128 MiB VMEM -> TN up to full Cout so activations stream once, TR=512.
        return dict(name="v6e", vmem_cap=96 << 20, tr=512, tn=1024)
    if "v7" in kind:
        # v7x: 64 MiB VMEM -> cap request at 48 MiB, smaller tile plan than v6e.
        return dict(name="v7x", vmem_cap=48 << 20, tr=256, tn=512)
    if "v5p" in kind or "v5" in kind or "v4" in kind:
        return dict(name="v5p", vmem_cap=96 << 20, tr=512, tn=512)
    return dict(name="other", vmem_cap=48 << 20, tr=256, tn=256)


# -------------------- single-buffered weight specs (probed) -------------------
@functools.lru_cache(maxsize=None)
def _single_buffer_ok():
    """Probe whether BlockSpec(pipeline_mode=pl.Buffered(1)) is supported here."""
    try:
        spec = pl.BlockSpec((8, 128), lambda i: (0, 0), pipeline_mode=pl.Buffered(1))
    except Exception:
        return False
    try:
        def _k(x_ref, o_ref):
            o_ref[...] = x_ref[...] * 2.0

        out = pl.pallas_call(
            _k,
            out_shape=jax.ShapeDtypeStruct((8, 128), jnp.float32),
            grid=(1,),
            in_specs=[spec],
            out_specs=pl.BlockSpec((8, 128), lambda i: (0, 0)),
        )(jnp.ones((8, 128), jnp.float32))
        jax.block_until_ready(out)
        return True
    except Exception:
        return False


def _resident_spec(block_shape, index_map):
    """Weight/bias BlockSpec: single-buffered when supported (their block index is
    constant along the inner grid axes, so double buffering only wastes VMEM)."""
    if _single_buffer_ok():
        return pl.BlockSpec(block_shape, index_map, pipeline_mode=pl.Buffered(1))
    return pl.BlockSpec(block_shape, index_map)


# ------------------------------ Pallas kernels --------------------------------
def _conv_taps_kernel(xm_ref, xt_ref, w_ref, b_ref, o_ref, *, ntaps, tr, apply_act):
    """One (TR, TN) output tile of a stride-1, `ntaps`-tap conv along rows.

    xm_ref: (TR, Cin')  slab rows [r*TR, r*TR + TR)
    xt_ref: (8,  Cin')  next 8 slab rows (taps that cross the tile boundary)
    w_ref : (ntaps, Cin', TN)   b_ref: (1, TN) f32   o_ref: (TR, TN)
    """
    x = jnp.concatenate([xm_ref[...], xt_ref[...]], axis=0)      # (TR + 8, Cin')
    acc = jnp.dot(x[0:tr], w_ref[0], preferred_element_type=jnp.float32)
    for q in range(1, ntaps):
        acc = acc + jnp.dot(x[q:q + tr], w_ref[q],
                            preferred_element_type=jnp.float32)
    acc = acc + b_ref[...]
    if apply_act:
        acc = jnp.where(acc >= 0.0, acc, NEG_SLOPE * acc)
    o_ref[...] = acc.astype(o_ref.dtype)


def _fused_tail_kernel(xm_ref, xt_ref, w1_ref, b1_ref, w2_ref, b2_ref, o_ref,
                       *, k1, k2, tr, h_valid):
    """Fused: (K1,1) conv -> LeakyReLU -> (K2,1) conv to the 1-channel score.  [R2]"""
    pad2 = (k2 - 1) // 2
    ext = tr + k2 - 1
    r = pl.program_id(1)

    x = jnp.concatenate([xm_ref[...], xt_ref[...]], axis=0)      # (TR + 8, Cin)

    # conv1: rows extended by K2-1 so conv2 is applied entirely in-tile (the halo rows
    # are recomputed, never re-read from HBM).
    acc = jnp.dot(x[0:ext], w1_ref[0], preferred_element_type=jnp.float32)
    for q in range(1, k1):
        acc = acc + jnp.dot(x[q:q + ext], w1_ref[q],
                            preferred_element_type=jnp.float32)
    acc = acc + b1_ref[...]
    y = jnp.where(acc >= 0.0, acc, NEG_SLOPE * acc)              # (ext, C1) f32

    # conv2 'same' zero padding: rows outside [0, H) must be zero before its taps.
    g = r * tr - pad2 + lax.broadcasted_iota(jnp.int32, (ext, 1), 0)
    y = jnp.where(jnp.logical_and(g >= 0, g < h_valid), y, 0.0)

    # conv2 has Cout == 1 -> 3-tap multiply-reduce (VPU/XLU) instead of an N=1 matmul.
    score = jnp.sum(y[0:tr] * w2_ref[0], axis=-1, keepdims=True)
    for q in range(1, k2):
        score = score + jnp.sum(y[q:q + tr] * w2_ref[q], axis=-1, keepdims=True)
    score = score + b2_ref[...]
    o_ref[...] = score.astype(o_ref.dtype)


# ------------------------------ layer wrappers ---------------------------------
def _phase_weights(weight, stride):
    """(Cout, Cin, K) -> (ceil(K/stride), stride*Cin, Cout): taps of the equivalent
    stride-1 conv on the phase-packed input (missing taps are zero)."""
    Cout, Cin, K = weight.shape
    ntaps = _cdiv(K, stride)
    wt = jnp.transpose(weight.astype(jnp.float32), (2, 1, 0))    # (K, Cin, Cout)
    w = jnp.zeros((ntaps, stride, Cin, Cout), jnp.float32)
    for k in range(K):
        q, r = divmod(k, stride)
        w = w.at[q, r].set(wt[k])
    return w.reshape(ntaps, stride * Cin, Cout)


def conv_kh1(x_mhc, weight, bias, *, stride, pad, apply_act, compute_dtype):
    """Conv with kernel (K,1), stride (stride,1), zero pad (pad,0) on (M, H, Cin)."""
    M, Hin, Cin = x_mhc.shape
    Cout, Cin_w, K = weight.shape
    assert Cin_w == Cin
    Hout = (Hin + 2 * pad - K) // stride + 1
    assert Hout >= 1

    # [R1] strided conv -> stride-1 conv on the phase-packed input.
    ntaps = _cdiv(K, stride)
    Cin2 = stride * Cin

    cfg = _tpu_config()
    align = 16 if compute_dtype == jnp.bfloat16 else 8            # [R11]
    TR = min(cfg["tr"], _round_up(Hout, align))
    n_rows = _cdiv(Hout, TR)

    if Cout % 128 != 0:
        TN = Cout                                                  # [R9]
    else:
        TN = min(cfg["tn"], Cout)                                  # [R4/R5/R6]
        if Cout % TN != 0:
            TN = 128
    n_cout = Cout // TN

    # Single zero-pad pass: conv zero padding + row-tile alignment in one go.  [R8]
    Hq = n_rows * TR + 8              # +8 rows keep the boundary-tap block in bounds
    Hp = Hq * stride
    bot = Hp - pad - Hin
    assert bot >= 0
    xp = jnp.pad(x_mhc.astype(compute_dtype), ((0, 0), (pad, bot), (0, 0)))
    xq = xp.reshape(M, Hq, Cin2)                                   # free reshape

    wq = _phase_weights(weight, stride).astype(compute_dtype)      # (ntaps, Cin2, Cout)
    bq = bias.reshape(1, Cout).astype(jnp.float32)

    # [R3] explicit buffer counts, per-generation cap.
    isz = jnp.dtype(compute_dtype).itemsize
    wbuf = 1 if _single_buffer_ok() else 2                         # [R7]
    need = (2 * (TR * Cin2 + 8 * Cin2) * isz                       # slab inputs x2 bufs
            + 2 * TR * TN * isz                                    # output tile x2 bufs
            + wbuf * (ntaps * Cin2 * TN * isz + TN * 4)            # weights + bias
            + (ntaps + 1) * (TR + 8) * Cin2 * isz                  # in-kernel tap temps
            + TR * TN * 4)                                         # f32 accumulator
    vmem_limit = int(min(cfg["vmem_cap"], max(need + (8 << 20), 32 << 20)))

    out = pl.pallas_call(
        functools.partial(_conv_taps_kernel, ntaps=ntaps, tr=TR, apply_act=apply_act),
        out_shape=jax.ShapeDtypeStruct((M, n_rows * TR, Cout), compute_dtype),
        # Row tiles innermost -> weight/bias block index constant between steps; the
        # M = B*period axis keeps both v7x TensorCores busy when n_cout == 1.   [R10]
        grid=(n_cout, M, n_rows),
        in_specs=[
            pl.BlockSpec((None, TR, Cin2), lambda n, m, r: (m, r, 0)),
            pl.BlockSpec((None, 8, Cin2),
                         lambda n, m, r: (m, (r + 1) * (TR // 8), 0)),
            _resident_spec((ntaps, Cin2, TN), lambda n, m, r: (0, 0, n)),
            _resident_spec((1, TN), lambda n, m, r: (0, n)),
        ],
        out_specs=pl.BlockSpec((None, TR, TN), lambda n, m, r: (m, r, n)),
        compiler_params=pltpu.CompilerParams(
            dimension_semantics=("parallel", "parallel", "parallel"),
            vmem_limit_bytes=vmem_limit,
        ),
    )(xq, xq, wq, bq)

    # Filler rows (>= Hout) are finite LeakyReLU(bias); dropped lazily (the consumer's
    # own pad/transpose is the only pass that touches this array).
    return out[:, :Hout, :]


def fused_final_layers(x_mhc, w1, b1, w2, b2, *, compute_dtype):
    """Fused tail: channels[-1] -> 1024 ('same', K=5) -> LeakyReLU -> 1 ('same', K=3)."""
    M, H, Cin = x_mhc.shape
    C1, Cin1, K1 = w1.shape
    C2, C1b, K2 = w2.shape
    assert Cin1 == Cin and C1b == C1 and C2 == 1
    pad1, pad2 = (K1 - 1) // 2, (K2 - 1) // 2

    cfg = _tpu_config()
    align = 16 if compute_dtype == jnp.bfloat16 else 8
    TR = min(cfg["tr"], _round_up(H, align))
    n_rows = _cdiv(H, TR)
    Hq = n_rows * TR + 8
    xp = jnp.pad(x_mhc.astype(compute_dtype),
                 ((0, 0), (pad1 + pad2, Hq - (pad1 + pad2) - H), (0, 0)))

    w1q = _phase_weights(w1, 1).astype(compute_dtype)              # (K1, Cin, C1)
    b1q = b1.reshape(1, C1).astype(jnp.float32)
    w2q = jnp.transpose(w2, (2, 0, 1)).astype(jnp.float32)         # (K2, 1, C1)
    b2q = b2.reshape(1, 1).astype(jnp.float32)

    isz = jnp.dtype(compute_dtype).itemsize
    wbuf = 1 if _single_buffer_ok() else 2
    ext = TR + K2 - 1
    need = (2 * (TR * Cin + 8 * Cin) * isz + 2 * TR * isz
            + wbuf * (K1 * Cin * C1 * isz + C1 * 4 + K2 * C1 * 4 + 4)
            + (K1 + 1) * (TR + 8) * Cin * isz + 3 * ext * C1 * 4)
    vmem_limit = int(min(cfg["vmem_cap"], max(need + (8 << 20), 32 << 20)))

    out = pl.pallas_call(
        functools.partial(_fused_tail_kernel, k1=K1, k2=K2, tr=TR, h_valid=H),
        out_shape=jax.ShapeDtypeStruct((M, n_rows * TR, 1), compute_dtype),
        grid=(M, n_rows),
        in_specs=[
            pl.BlockSpec((None, TR, Cin), lambda m, r: (m, r, 0)),
            pl.BlockSpec((None, 8, Cin), lambda m, r: (m, (r + 1) * (TR // 8), 0)),
            _resident_spec((K1, Cin, C1), lambda m, r: (0, 0, 0)),
            _resident_spec((1, C1), lambda m, r: (0, 0)),
            _resident_spec((K2, 1, C1), lambda m, r: (0, 0, 0)),
            _resident_spec((1, 1), lambda m, r: (0, 0)),
        ],
        out_specs=pl.BlockSpec((None, TR, 1), lambda m, r: (m, r, 0)),
        compiler_params=pltpu.CompilerParams(
            dimension_semantics=("parallel", "parallel"),
            vmem_limit_bytes=vmem_limit,
        ),
    )(xp, xp, w1q, b1q, w2q, b2q)
    return out[:, :H, :]


# ----------------------------- parameters ------------------------------------
def _weight_norm_effective(v, g):
    """PyTorch weight_norm: w = g * v / ||v||, norm per out-channel over (Cin, K, 1)."""
    norm = jnp.sqrt(jnp.sum(v * v, axis=(1, 2, 3), keepdims=True))
    return (g * v / norm)[..., 0]                    # (Cout, Cin, K)


def init_params(key, kernel_size, channels):
    chans = [1] + list(channels)
    layers = []
    for i in range(len(chans) - 1):
        key, kv, kb = jax.random.split(key, 3)
        v = 0.1 * jax.random.normal(kv, (chans[i + 1], chans[i], kernel_size, 1), jnp.float32)
        g = jnp.sqrt(jnp.sum(v * v, axis=(1, 2, 3), keepdims=True))  # weight_norm init
        b = 0.1 * jax.random.normal(kb, (chans[i + 1],), jnp.float32)
        layers.append((_weight_norm_effective(v, g), b))

    final = []
    for (cin, cout, k) in [(chans[-1], 1024, 5), (1024, 1, 3)]:
        key, kv, kb = jax.random.split(key, 3)
        v = 0.05 * jax.random.normal(kv, (cout, cin, k, 1), jnp.float32)
        g = jnp.sqrt(jnp.sum(v * v, axis=(1, 2, 3), keepdims=True))
        b = 0.05 * jax.random.normal(kb, (cout,), jnp.float32)
        final.append((_weight_norm_effective(v, g), b))

    return {"layers": layers, "final": final}


# ------------------------------ forward --------------------------------------
def subdiscriminator_forward(x, params, *, period, kernel_size, stride,
                             compute_dtype=jnp.float32, feature_dtype=jnp.float32):
    """x: (B, 1, T).  Returns (score (B, 1, Hlast*period), feature maps list in NCHW)."""
    B, _, T = x.shape
    if T % period > 0:
        x = jnp.pad(x, ((0, 0), (0, 0), (0, period - T % period)), mode="reflect")
        T = x.shape[-1]
    H = T // period

    # (B, 1, T) -> resident (M, H, C) layout, M = B*period; kept across all layers.
    h = x.reshape(B, H, period).transpose(0, 2, 1).reshape(B * period, H, 1)
    h = h.astype(compute_dtype)

    feats = []
    pad0 = (kernel_size - 1) // 2
    for (w, b) in params["layers"]:
        h = conv_kh1(h, w, b, stride=stride, pad=pad0, apply_act=True,
                     compute_dtype=compute_dtype)
        feats.append(h)

    (w1, b1), (w2, b2) = params["final"]
    score = fused_final_layers(h, w1, b1, w2, b2, compute_dtype=compute_dtype)

    Hlast = score.shape[1]
    out = score.reshape(B, period, Hlast).transpose(0, 2, 1).reshape(B, 1, Hlast * period)

    # Feature maps -> NCHW once at the end; cast so the bf16 production path still
    # returns float32 features (feature-matching loss).
    features = [
        f.reshape(B, period, f.shape[1], f.shape[2]).transpose(0, 3, 2, 1)
         .astype(feature_dtype)
        for f in feats
    ]
    return out, features


# --------------------------- pure-JAX reference -------------------------------
def _ref_conv(x, w, b, stride, pad, act):
    y = lax.conv_general_dilated(
        x, w[..., None], window_strides=(stride, 1),
        padding=((pad, pad), (0, 0)),
        dimension_numbers=("NCHW", "OIHW", "NCHW"),
        precision=lax.Precision.HIGHEST,
    ) + b.reshape(1, -1, 1, 1)
    return jnp.where(y >= 0, y, NEG_SLOPE * y) if act else y


def reference_forward(x, params, *, period, kernel_size, stride):
    B, _, T = x.shape
    if T % period > 0:
        x = jnp.pad(x, ((0, 0), (0, 0), (0, period - T % period)), mode="reflect")
        T = x.shape[-1]
    x = x.reshape(B, 1, T // period, period)
    feats = []
    for (w, b) in params["layers"]:
        x = _ref_conv(x, w, b, stride, (kernel_size - 1) // 2, True)
        feats.append(x)
    (w1, b1), (w2, b2) = params["final"]
    x = _ref_conv(x, w1, b1, 1, 2, True)
    x = _ref_conv(x, w2, b2, 1, 1, False)
    return x.reshape(x.shape[0], x.shape[1], -1), feats


def _run_and_check(x, params, *, period, kernel_size, stride, atol=5e-3, rtol=5e-3):
    out, feats = subdiscriminator_forward(
        x, params, period=period, kernel_size=kernel_size, stride=stride,
        compute_dtype=jnp.float32)
    out = jax.block_until_ready(out)
    feats = [jax.block_until_ready(f) for f in feats]
    ref_out, ref_feats = reference_forward(
        x, params, period=period, kernel_size=kernel_size, stride=stride)
    assert out.shape == ref_out.shape, (out.shape, ref_out.shape)
    assert bool(jnp.allclose(out, ref_out, atol=atol, rtol=rtol)), \
        float(jnp.max(jnp.abs(out - ref_out)))
    assert len(feats) == len(ref_feats)
    for f, rf in zip(feats, ref_feats):
        assert f.shape == rf.shape, (f.shape, rf.shape)
        assert bool(jnp.allclose(f, rf, atol=atol, rtol=rtol)), \
            float(jnp.max(jnp.abs(f - rf)))
    return ref_out


# --------------------------------- main ---------------------------------------
if __name__ == "__main__":
    key = jax.random.PRNGKey(0)
    k1, k2, k3, k4 = jax.random.split(key, 4)

    # Config A: period 3 / stride 3 / narrow channels.  T % period != 0 exercises the
    # reflect pad; tiny H exercises the small-tail / single-tile path.
    cfg_a = dict(period=3, kernel_size=5, stride=3)
    xa = jax.random.normal(k1, (2, 1, 22), jnp.float32)
    params_a = init_params(k2, cfg_a["kernel_size"], [4, 8, 16])
    ref_a = _run_and_check(xa, params_a, **cfg_a)

    # Config B: period 2 / stride 2 (different phase decomposition) plus a 128-channel
    # layer so a full 128-lane output tile / larger contraction is exercised.
    cfg_b = dict(period=2, kernel_size=5, stride=2)
    xb = jax.random.normal(k3, (1, 1, 129), jnp.float32)
    params_b = init_params(k4, cfg_b["kernel_size"], [8, 32, 128])
    _run_and_check(xb, params_b, **cfg_b)

    # bf16 production path on config A: bf16 MXU inputs, f32 accumulation + epilogue,
    # float32 feature maps.
    out_bf16, feats_bf16 = subdiscriminator_forward(
        xa, params_a, compute_dtype=jnp.bfloat16, **cfg_a)
    out_bf16 = jax.block_until_ready(out_bf16).astype(jnp.float32)
    assert out_bf16.shape == ref_a.shape
    assert bool(jnp.all(jnp.isfinite(out_bf16)))
    assert bool(jnp.allclose(out_bf16, ref_a, atol=1e-1, rtol=1e-1))
    assert feats_bf16[0].dtype == jnp.float32

    print("KERNEL_OK")
</pallas_src>

<mosaic_0001>
module attributes {stable_mosaic.version = 11 : i64} {
  func.func @_k(%arg0: i32, %arg1: memref<8x128xf32, #tpu.memory_space<vmem>>, %arg2: memref<8x128xf32, #tpu.memory_space<vmem>>) attributes {dimension_semantics = [#tpu.dimension_semantics<arbitrary>], iteration_bounds = array<i64: 1>, scalar_prefetch = 0 : i64, scratch_operands = 0 : i64, tpu.core_type = #tpu.core_type<tc>, window_params = [{pipeline_mode = #tpu.pipeline_mode<synchronous>, transform_indices = @transform_0, window_bounds = array<i64: 8, 128>}, {pipeline_mode = #tpu.pipeline_mode<synchronous>, transform_indices = @transform_1, window_bounds = array<i64: 8, 128>}]} {
    %c0 = arith.constant 0 : index
    %c0_0 = arith.constant 0 : index
    %0 = vector.load %arg1[%c0, %c0_0] : memref<8x128xf32, #tpu.memory_space<vmem>>, vector<8x128xf32>
    %cst = arith.constant 2.000000e+00 : f32
    %1 = vector.broadcast %cst : f32 to vector<8x128xf32>
    %2 = arith.mulf %0, %1 : vector<8x128xf32>
    %c0_1 = arith.constant 0 : index
    %c0_2 = arith.constant 0 : index
    %3 = vector.load %arg2[%c0_1, %c0_2] : memref<8x128xf32, #tpu.memory_space<vmem>>, vector<8x128xf32>
    tpu.vector_store %arg2[%c0_1, %c0_2], %2 {strides = array<i32>} : memref<8x128xf32, #tpu.memory_space<vmem>>, vector<8x128xf32>,
    return
  }
  func.func @transform_0(%arg0: i32) -> (i32, i32) {
    %c0_i32 = arith.constant 0 : i32
    %c0_i32_0 = arith.constant 0 : i32
    %c0_i32_1 = arith.constant 0 : i32
    return %c0_i32, %c0_i32_0 : i32, i32
  }
  func.func @transform_1(%arg0: i32) -> (i32, i32) {
    %c0_i32 = arith.constant 0 : i32
    %c0_i32_0 = arith.constant 0 : i32
    %c0_i32_1 = arith.constant 0 : i32
    return %c0_i32, %c0_i32_0 : i32, i32
  }
}

module attributes {stable_mosaic.version = 11 : i64} {
  func.func @_conv_taps_kernel(%arg0: i32, %arg1: i32, %arg2: i32, %arg3: memref<1x8x3xf32, #tpu.memory_space<vmem>>, %arg4: memref<1x8x3xf32, #tpu.memory_space<vmem>>, %arg5: memref<2x3x4xf32, #tpu.memory_space<vmem>>, %arg6: memref<1x4xf32, #tpu.memory_space<vmem>>, %arg7: memref<1x8x4xf32, #tpu.memory_space<vmem>>) attributes {dimension_semantics = [#tpu.dimension_semantics<parallel>, #tpu.dimension_semantics<parallel>, #tpu.dimension_semantics<parallel>], iteration_bounds = array<i64: 1, 6, 1>, scalar_prefetch = 0 : i64, scratch_operands = 0 : i64, tpu.core_type = #tpu.core_type<tc>, window_params = [{transform_indices = @transform_0, window_bounds = array<i64: 1, 8, 3>}, {transform_indices = @transform_1, window_bounds = array<i64: 1, 8, 3>}, {transform_indices = @transform_2, window_bounds = array<i64: 2, 3, 4>}, {transform_indices = @transform_3, window_bounds = array<i64: 1, 4>}, {transform_indices = @transform_4, window_bounds = array<i64: 1, 8, 4>}]} {
    %c0 = arith.constant 0 : index
    %c0_0 = arith.constant 0 : index
    %c0_1 = arith.constant 0 : index
    %0 = vector.load %arg3[%c0, %c0_0, %c0_1] : memref<1x8x3xf32, #tpu.memory_space<vmem>>, vector<1x8x3xf32>
    %1 = vector.shape_cast %0 : vector<1x8x3xf32> to vector<8x3xf32>
    %c0_2 = arith.constant 0 : index
    %c0_3 = arith.constant 0 : index
    %c0_4 = arith.constant 0 : index
    %2 = vector.load %arg4[%c0_2, %c0_3, %c0_4] : memref<1x8x3xf32, #tpu.memory_space<vmem>>, vector<1x8x3xf32>
    %3 = vector.shape_cast %2 : vector<1x8x3xf32> to vector<8x3xf32>
    %4 = tpu.concatenate %1, %3 in 0 : vector<8x3xf32>, vector<8x3xf32> -> vector<16x3xf32>
    %5 = vector.extract_strided_slice %4 {offsets = [0, 0], sizes = [8, 3], strides = [1, 1]} : vector<16x3xf32> to vector<8x3xf32>
    %c0_5 = arith.constant 0 : index
    %c0_6 = arith.constant 0 : index
    %c0_7 = arith.constant 0 : index
    %6 = vector.load %arg5[%c0_5, %c0_6, %c0_7] : memref<2x3x4xf32, #tpu.memory_space<vmem>>, vector<1x3x4xf32>
    %7 = vector.shape_cast %6 : vector<1x3x4xf32> to vector<3x4xf32>
    %cst = arith.constant dense<0.000000e+00> : vector<8x4xf32>
    %8 = tpu.matmul %5, %7, %cst {dimension_numbers = #tpu.dot_dimension_numbers<[1], [0], [0], [1], [0, 0, 1, 1], [], []>} : vector<8x3xf32>, vector<3x4xf32>, vector<8x4xf32> -> vector<8x4xf32>
    %9 = vector.extract_strided_slice %4 {offsets = [1, 0], sizes = [8, 3], strides = [1, 1]} : vector<16x3xf32> to vector<8x3xf32>
    %c1 = arith.constant 1 : index
    %c0_8 = arith.constant 0 : index
    %c0_9 = arith.constant 0 : index
    %10 = vector.load %arg5[%c1, %c0_8, %c0_9] : memref<2x3x4xf32, #tpu.memory_space<vmem>>, vector<1x3x4xf32>
    %11 = vector.shape_cast %10 : vector<1x3x4xf32> to vector<3x4xf32>
    %cst_10 = arith.constant dense<0.000000e+00> : vector<8x4xf32>
    %12 = tpu.matmul %9, %11, %cst_10 {dimension_numbers = #tpu.dot_dimension_numbers<[1], [0], [0], [1], [0, 0, 1, 1], [], []>} : vector<8x3xf32>, vector<3x4xf32>, vector<8x4xf32> -> vector<8x4xf32>
    %13 = arith.addf %8, %12 : vector<8x4xf32>
    %c0_11 = arith.constant 0 : index
    %c0_12 = arith.constant 0 : index
    %14 = vector.load %arg6[%c0_11, %c0_12] : memref<1x4xf32, #tpu.memory_space<vmem>>, vector<1x4xf32>
    %15 = vector.broadcast %14 : vector<1x4xf32> to vector<8x4xf32>
    %16 = arith.addf %13, %15 : vector<8x4xf32>
    %cst_13 = arith.constant 0.000000e+00 : f32
    %17 = vector.broadcast %cst_13 : f32 to vector<8x4xf32>
    %18 = arith.cmpf oge, %16, %17 : vector<8x4xf32>
    %cst_14 = arith.constant 0.00999999977 : f32
    %19 = vector.broadcast %cst_14 : f32 to vector<8x4xf32>
    %20 = arith.mulf %19, %16 : vector<8x4xf32>
    %21 = arith.select %18, %16, %20 : vector<8x4xi1>, vector<8x4xf32>
    %c0_15 = arith.constant 0 : index
    %c0_16 = arith.constant 0 : index
    %c0_17 = arith.constant 0 : index
    %22 = vector.load %arg7[%c0_15, %c0_16, %c0_17] : memref<1x8x4xf32, #tpu.memory_space<vmem>>, vector<1x8x4xf32>
    %23 = vector.shape_cast %22 : vector<1x8x4xf32> to vector<8x4xf32>
    %24 = vector.shape_cast %21 : vector<8x4xf32> to vector<1x8x4xf32>
    tpu.vector_store %arg7[%c0_15, %c0_16, %c0_17], %24 {strides = array<i32>} : memref<1x8x4xf32, #tpu.memory_space<vmem>>, vector<1x8x4xf32>,
    return
  }
  func.func @transform_0(%arg0: i32, %arg1: i32, %arg2: i32) -> (i32, i32, i32) {
    %c0_i32 = arith.constant 0 : i32
    %c0_i32_0 = arith.constant 0 : i32
    return %arg1, %arg2, %c0_i32 : i32, i32, i32
  }
  func.func @transform_1(%arg0: i32, %arg1: i32, %arg2: i32) -> (i32, i32, i32) {
    %c1_i32 = arith.constant 1 : i32
    %0 = arith.addi %arg2, %c1_i32 : i32
    %c1_i32_0 = arith.constant 1 : i32
    %1 = arith.muli %0, %c1_i32_0 : i32
    %c0_i32 = arith.constant 0 : i32
    %c0_i32_1 = arith.constant 0 : i32
    return %arg1, %1, %c0_i32 : i32, i32, i32
  }
  func.func @transform_2(%arg0: i32, %arg1: i32, %arg2: i32) -> (i32, i32, i32) {
    %c0_i32 = arith.constant 0 : i32
    %c0_i32_0 = arith.constant 0 : i32
    %c0_i32_1 = arith.constant 0 : i32
    return %c0_i32, %c0_i32_0, %arg0 : i32, i32, i32
  }
  func.func @transform_3(%arg0: i32, %arg1: i32, %arg2: i32) -> (i32, i32) {
    %c0_i32 = arith.constant 0 : i32
    %c0_i32_0 = arith.constant 0 : i32
    return %c0_i32, %arg0 : i32, i32
  }
  func.func @transform_4(%arg0: i32, %arg1: i32, %arg2: i32) -> (i32, i32, i32) {
    %c0_i32 = arith.constant 0 : i32
    return %arg1, %arg2, %arg0 : i32, i32, i32
  }
}

</mosaic_0001>

<bundles_post_ra>
// kernel: tpu_custom_call.1
= control target key start
LH: loop header
LB: loop body
LE: loop exit
PB: predicated region body
PF: predicated region fallthrough
CT: control target
= control target key end

     0   :  { %6 = vsyncpa [#allocation3], 0  ;;  %s125_s0 = inlined_call_operand.hbm [shape: f32[8,128], index: 0, kind: input, shape index: {}]   ;;  %s126_s1 = inlined_call_operand.hbm [shape: f32[8,128], index: 1, kind: output, shape index: {}]  }
   0x1   :  { %7 = vsyncpa [#allocation4], 0  ;;  %s89_s6 = smov [#allocation2]   ;;  %s41_s10 = scalar_lea.hbm %s125_s0, 128 }
   0x2   :  { %s14_s7 = sshll.u32 %s89_s6, 4  ;;  %p42_p0 = scmp.ne.s32.totalorder %s125_s0, %s41_s10  ;;  %s15_s7 = int_to_ptr.vmem [resolvable:$true] %s14_s7 }
   0x3   :  { %p45_p1 = scmp.lt.u32.totalorder %s41_s10, %s125_s0 }
   0x5   :  { %p47_p2 = pnand %p45_p1, %p42_p0 }
   0x7   :  { %50 = shalt.err (!%p47_p2)
}
   0x8   :  { %s51_s15 = scalar_lea.vmem %s15_s7, 128  ;;  %p56_p4 = scmp.lt.s32.totalorder %s15_s7, %s15_s7 }
   0x9   :  { %p52_p3 = scmp.ne.s32.totalorder %s15_s7, %s51_s15  ;;  %p57_p5 = scmp.lt.s32.totalorder %s51_s15, %s51_s15 }
   0xb   :  { %p58_p6 = por %p57_p5, %p56_p4 }
   0xd   :  { %p59_p7 = pnand %p58_p6, %p52_p3 }
   0xf   :  { %62 = shalt.err (!%p59_p7)
}
  0x10   :  { %17 = dma.hbm_to_vmem [thread:$0]  %s125_s0, 128, %s15_s7, [#allocation3]  }
  0x11   :  { %85 = dma.done.wait [#allocation3], 128  }
  0x12   :  { %86 = vsyncadd [#allocation3], 4294967168  ;;  %s90_s18 = smov [#allocation5]   ;;  %v21_v0 = vld [vmem:[#allocation2] sm:$0xff] }
  0x13   :  { %s30_s19 = sshll.u32 %s90_s18, 4  ;;  %v22_v1 = vmul.f32 2.0, %v21_v0  ;;  %s31_s19 = int_to_ptr.vmem [resolvable:$true] %s30_s19 }
  0x14   :  { %s63_s20 = scalar_lea.vmem %s31_s19, 128  ;;  %p68_p9 = scmp.lt.s32.totalorder %s31_s19, %s31_s19 }
  0x15   :  { %23 = vst [vmem:[#allocation5] sm:$0xff] %v22_v1  ;;  %p64_p8 = scmp.ne.s32.totalorder %s31_s19, %s63_s20  ;;  %p69_p10 = scmp.lt.s32.totalorder %s63_s20, %s63_s20 }
  0x17   :  { %p70_p11 = por %p69_p10, %p68_p9 }
  0x19   :  { %p71_p12 = pnand %p70_p11, %p64_p8 }
  0x1b   :  { %74 = shalt.err (!%p71_p12)
}
  0x1c   :  { %s75_s23 = scalar_lea.hbm %s126_s1, 128 }
  0x1d   :  { %p76_p13 = scmp.ne.s32.totalorder %s126_s1, %s75_s23  ;;  %p79_p0 = scmp.lt.u32.totalorder %s75_s23, %s126_s1 }
  0x1f   :  { %p81_p1 = pnand %p79_p0, %p76_p13 }
  0x21   :  { %84 = shalt.err (!%p81_p1)
}
  0x22   :  { %33 = dma.vmem_to_hbm [thread:$0]  %s31_s19, 128, %s126_s1, [#allocation4]  }
  0x23   :  { %87 = dma.done.wait [#allocation4], 128  }
  0x24   :  { %88 = vsyncadd [#allocation4], 4294967168 }
  0x25   :  { %37 = vsyncpa [#allocation3], 1 }
  0x26   :  { %38 = vsyncpa [#allocation4], 1 }

// kernel: tpu_custom_call.1
= control target key start
LH: loop header
LB: loop body
LE: loop exit
PB: predicated region body
PF: predicated region fallthrough
CT: control target
= control target key end

     0   :  { %s738_s15 = smov 0   ;;  %s740_s16 = smov 0   ;;  %s783_s0 = inlined_call_operand.vmem [shape: f32[6,16,3], index: 0, kind: input, shape index: {}]   ;;  %s784_s1 = inlined_call_operand.vmem [shape: f32[6,16,3], index: 1, kind: input, shape index: {}]   ;;  %s785_s2 = inlined_call_operand.vmem [shape: f32[2,3,4], index: 2, kind: input, shape index: {}]   ;;  %s786_s3 = inlined_call_operand.vmem [shape: f32[1,4], index: 3, kind: input, shape index: {}]   ;;  %s787_s4 = inlined_call_operand.vmem [shape: f32[6,8,4], index: 4, kind: output, shape index: {}]  }
   0x1   :  { %s742_s17 = smov 0  }
   0x2 LB: > { %s29_s18 = sadd.s32 1, %s705_s16  ;;  %p629_p0 = scmp.ge.s32.totalorder %s709_s17, 1  ;;  %s709_s17 = sphi %s742_s17, %s14_s17   ;;  %s705_s16 = sphi %s740_s16, %s789_s16   ;;  %s701_s15 = sphi %s738_s15, %s788_s15  }
   0x3   : > { %p31_p1 = scmp.ge.s32.totalorder %s29_s18, 6  ;;  %p226_p2 = scmp.lt.s32.totalorder %s709_s17, 7 }
   0x5   : > { %s791_s18 = smov (%p31_p1, %s29_s18), 0  ;;  %p227_p3 = pnand %p629_p0, %p226_p2 }
   0x6   : > { %v313_v0 = vld [vmem:[%s785_s2] sm:$0x7] (!%p227_p3)  ;;  %vm325_vm0 = vcmask (!%p227_p3), 1042432   ;;  %p276_p4 = scmp.lt.s32.totalorder (!%p227_p3), %s701_s15, 5  ;;  %v711_v1 = vmov (!%p227_p3), 0.0   ;;  %vm712_vm1 = vmmov (!%p227_p3), 0  }
   0x7   : > { %230 = sbr.rel (%p227_p3) target bundleno = 242 (0xf2), region = 36  ;;  %656 = vmatprep.subr.mxu1 (!%p227_p3), %v711_v1  ;;  %651 = vmatprep.subr.mxu0 (!%p227_p3), %v711_v1  ;;  %v635_v2 = vld [vmem:[%s785_s2 + $0x4] sm:$0x7] (!%p227_p3)  ;;  %vm322_vm2 = vcmask (!%p227_p3), 23552   ;;  %vm318_vm3 = vcmask (!%p227_p3), 1046528   ;;  %vm485_vm5 = vcmask (!%p227_p3), 31744  }
   0x8   : > { %657 = vmatpush3.msk.msra.mxu1 (!%p227_p3), %vm325_vm0, %v313_v0  ;;  %658 = vmatprep.mubr.msk.f32.mxu1 (!%p227_p3), %vm712_vm1, %v711_v1  ;;  %v640_v11 = vld [vmem:[%s786_s3] ss:$0 sm:$0xff] (!%p227_p3) }
   0x9   : > { %652 = vmatpush3.msk.msra.mxu0 (!%p227_p3), %vm325_vm0, %v635_v2  ;;  %653 = vmatprep.mubr.msk.f32.mxu0 (!%p227_p3), %vm712_vm1, %v711_v1 }
   0xe   : > { %s793_s15 = smov (!%p276_p4, %s701_s15), 5 }
   0xf   : > { %s643_s23 = sshll.u32 %s793_s15, 4  ;;  %s634_s7 = sshll.u32 %s793_s15, 3 }
  0x10   : > { %s283_s26 = scalar_lea.vmem %s783_s0, %s643_s23  ;;  %s645_s27 = sadd.s32 8, %s643_s23 }
  0x11   : > { %s292_s30 = scalar_lea.vmem %s784_s1, %s645_s27  ;;  %v311_v3 = vld [vmem:[%s283_s26] sm:$0xff]  ;;  %s310_s10 = scalar_lea.vmem %s787_s4, %s634_s7 }
  0x12   : > { %v312_v4 = vld [vmem:[%s292_s30] sm:$0xff]  ;;  %v319_v5 = vrot.slane %v311_v3, 1  ;;  %659 = vmatmul.mubr.msk.f32.vlgmr.msra.gmra.mrb[0].mxu1 %vm322_vm2, %v311_v3 }
  0x13   : > { %v320_v6 = vrot.slane %v312_v4, 1 }
  0x15   : > { %v321_v7 = vsel %vm318_vm3, %v319_v5, %v320_v6 }
  0x16   : > { %654 = vmatmul.mubr.msk.f32.vlgmr.msra.gmra.mrb[0].mxu0 %vm322_vm2, %v321_v7 }
  0xe5   : > { %v470_v8 = vpop.f32.mrb[0].mxu1 }
  0xe6   : > { %v660_v9 = vpop.f32.mrb[1].mxu1 }
  0xe9   : > { %v395_v10 = vpop.f32.mrb[0].mxu0 }
  0xea   : > { %v471_v12 = vadd.f32 %v470_v8, %v395_v10  ;;  %v655_v13 = vpop.f32.mrb[1].mxu0 }
  0xec   : > { %v481_v14 = vadd.f32 %v640_v11, %v471_v12 }
  0xee   : > { %vm482_vm4 = vcmp.ge.f32.partialorder %v481_v14, 0.0  ;;  %v483_v15 = vmul.f32 0.01, %v481_v14 }
  0xf0   : > { %v484_v16 = vsel %vm482_vm4, %v481_v14, %v483_v15 }
  0xf1   : > { %486 = vst.msk [vmem:[%s310_s10] sm:$0xff] %vm485_vm5, %v484_v16 }
  0xf2 PF: > { %s14_s17 = sadd.s32 1, %s709_s17   ;;  %s788_s15 = smov %s705_s16 }
  0xf3   : > { %p11_p5 = scmp.ge.s32.totalorder %s14_s17, 8   ;;  %s789_s16 = smov %s791_s18 }
  0xf5   :  { %13 = sbr.rel (!%p11_p5) target bundleno = 2 (0x2), region = 76 }

</bundles_post_ra>
